<compile_context>
chip_gen: v7x
topology: tpu7x:2x2x1
jax: 0.10.0
libtpu: 0.0.40
codegen_flags: <defaults>
</compile_context>

<pallas_src>
import math

import numpy as np
import jax
import jax.numpy as jnp
from jax import lax
from jax.experimental import pallas as pl
from jax.experimental.pallas import tpu as pltpu

# ---------------------------------------------------------------------------
# Configuration (mirrors the PyTorch cfg dict).  rtb_data_channels must be 1
# for the reference module's Linear(rnn_hid_dim*2, output_dim) to be
# self-consistent.
# ---------------------------------------------------------------------------
CFG = dict(rnn_hid_dim=128, output_dim=8, rtb_data_channels=1)
FEATURES = CFG["rnn_hid_dim"] * 2                      # 256 (= 2 * 128 lanes)
FEATURE_SIZE = int(math.sqrt(FEATURES))                # 16
OUT_DIM = CFG["output_dim"]                            # 8
OUT_PAD = 128                                          # lane-dense output width
BN_EPS = 1e-5

# Packed raw-parameter table (all conv / BN parameters are scalars or tiny
# KxK kernels because in_channels == 1).
_PARAM_LAYOUT = (
    ("l_c1_w", 1), ("l_c1_b", 1),          # left 1x1 conv
    ("l_bn1", 4),                          # gamma, beta, running_mean, running_var
    ("l_dw_w", 9), ("l_dw_b", 1),          # left DSConv depthwise 3x3
    ("l_pw_w", 1), ("l_pw_b", 1),          # left DSConv pointwise 1x1
    ("l_bn2", 4),
    ("l_c5_w", 25), ("l_c5_b", 1),         # left 5x5 conv
    ("r_c5_w", 25), ("r_c5_b", 1),         # right 5x5 conv
    ("r_bn1", 4),
    ("r_dw_w", 9), ("r_dw_b", 1),
    ("r_pw_w", 1), ("r_pw_b", 1),
    ("r_bn2", 4),
    ("r_c1_w", 1), ("r_c1_b", 1),          # right 1x1 conv
)
OFF = {}
_o = 0
for _name, _n in _PARAM_LAYOUT:
    OFF[_name] = _o
    _o += _n
N_SCALARS = _o


# ---------------------------------------------------------------------------
# Kernel
# ---------------------------------------------------------------------------
_SQRT_2_OVER_PI = 0.7978845608028654
_GELU_C = 0.044715


def _gelu(z):
    # tanh-approximation GELU: 5 VALU ops + 1 EUP tanh per element.
    zz = z * z
    inner = z * (_SQRT_2_OVER_PI + (_SQRT_2_OVER_PI * _GELU_C) * zz)
    hz = 0.5 * z
    return hz + hz * jnp.tanh(inner)


def _rene_kernel(sp_ref, x_ref, al3_ref, ar5_ref, ar3_ref,
                 wl_ref, wr_ref, wx_ref, blin_ref, out_ref):
    # x_ref: (TB, 256) f32, lane-dense.  Weight refs are bf16 and resident.
    x = x_ref[...]
    xb = x.astype(jnp.bfloat16)

    # SMEM scalars (BN / 1x1-conv folds, precomputed host-side):
    #   [0] a_l1  scale for left 1x1-conv+BN     [1] c_l1  shift
    #   [2] c_l2  shift after left DSConv+BN
    #   [3] c_r1  shift after right 5x5+BN       [4] c_r2  shift after right DSConv+BN
    # ------------------------------ left flow -------------------------------
    l2 = _gelu(x * sp_ref[0] + sp_ref[1])                                   # 1x1+BN+GELU
    l2 = _gelu(jnp.dot(l2.astype(jnp.bfloat16), al3_ref[...],
                       preferred_element_type=jnp.float32) + sp_ref[2])     # DSConv+BN+GELU

    # ------------------------------ right flow ------------------------------
    r2 = _gelu(jnp.dot(xb, ar5_ref[...],
                       preferred_element_type=jnp.float32) + sp_ref[3])     # 5x5+BN+GELU
    r2 = _gelu(jnp.dot(r2.astype(jnp.bfloat16), ar3_ref[...],
                       preferred_element_type=jnp.float32) + sp_ref[4])     # DSConv+BN+GELU

    # ------------- fused tail: 5x5 conv, right 1x1, residual, Linear --------
    # out = l2 @ (AL5 @ W) + r2 @ (w_rc1 * W) + x @ W + bias_fused
    out = jnp.dot(l2.astype(jnp.bfloat16), wl_ref[...],
                  preferred_element_type=jnp.float32)
    out = out + jnp.dot(r2.astype(jnp.bfloat16), wr_ref[...],
                        preferred_element_type=jnp.float32)
    out = out + jnp.dot(xb, wx_ref[...],
                        preferred_element_type=jnp.float32)
    out_ref[...] = out + blin_ref[...]


# ---------------------------------------------------------------------------
# Host-side parameter folding
# ---------------------------------------------------------------------------
def _round_up(n, m):
    return ((n + m - 1) // m) * m


def _conv_operator(w_kk, H, W, scale=1.0):
    """Dense (H*W, H*W) operator A such that out_flat = in_flat @ A equals a
    zero-padded 'same' single-channel cross-correlation with kernel w_kk."""
    k = w_kk.shape[0]
    p = k // 2
    A = np.zeros((H * W, H * W), np.float64)
    for i in range(H):
        for j in range(W):
            dst = i * W + j
            for ky in range(k):
                si = i + ky - p
                if si < 0 or si >= H:
                    continue
                for kx in range(k):
                    sj = j + kx - p
                    if sj < 0 or sj >= W:
                        continue
                    A[si * W + sj, dst] = w_kk[ky, kx] * scale
    return A


def prepare_kernel_params(scalar_params, wlin, blin):
    """Fold BN + 1x1 convs into affines, build dense conv operators, fold the
    tail (5x5 conv, right 1x1, residual, Linear) into fused matmul weights,
    and cast all matmul weights to bf16."""
    p = np.asarray(scalar_params, np.float64)
    H = W = FEATURE_SIZE

    def bn_fold(name):
        g, b, m, v = p[OFF[name]:OFF[name] + 4]
        s = g / math.sqrt(v + BN_EPS)
        return s, b - m * s

    s_l1, t_l1 = bn_fold("l_bn1")
    s_l2, t_l2 = bn_fold("l_bn2")
    s_r1, t_r1 = bn_fold("r_bn1")
    s_r2, t_r2 = bn_fold("r_bn2")

    a_l1 = p[OFF["l_c1_w"]] * s_l1
    c_l1 = p[OFF["l_c1_b"]] * s_l1 + t_l1
    c_l2 = s_l2 * (p[OFF["l_pw_w"]] * p[OFF["l_dw_b"]] + p[OFF["l_pw_b"]]) + t_l2
    b_l5 = p[OFF["l_c5_b"]]
    c_r1 = s_r1 * p[OFF["r_c5_b"]] + t_r1
    c_r2 = s_r2 * (p[OFF["r_pw_w"]] * p[OFF["r_dw_b"]] + p[OFF["r_pw_b"]]) + t_r2
    w_rc1 = p[OFF["r_c1_w"]]
    b_rc1 = p[OFF["r_c1_b"]]
    sp = jnp.asarray([a_l1, c_l1, c_l2, c_r1, c_r2], jnp.float32)

    # Dense conv operators (BN / pointwise scales folded in).
    al3 = _conv_operator(p[OFF["l_dw_w"]:OFF["l_dw_w"] + 9].reshape(3, 3),
                         H, W, scale=p[OFF["l_pw_w"]] * s_l2)
    al5 = _conv_operator(p[OFF["l_c5_w"]:OFF["l_c5_w"] + 25].reshape(5, 5), H, W)
    ar5 = _conv_operator(p[OFF["r_c5_w"]:OFF["r_c5_w"] + 25].reshape(5, 5),
                         H, W, scale=s_r1)
    ar3 = _conv_operator(p[OFF["r_dw_w"]:OFF["r_dw_w"] + 9].reshape(3, 3),
                         H, W, scale=p[OFF["r_pw_w"]] * s_r2)

    # Zero-padded linear weight (lane-dense output).
    wlin_np = np.asarray(wlin, np.float64)                 # (OUT_DIM, 256)
    Wp = np.zeros((FEATURES, OUT_PAD), np.float64)
    Wp[:, :OUT_DIM] = wlin_np.T

    # Fused tail weights (identical MXU FLOPs, fewer elementwise passes).
    wl = al5 @ Wp                                           # left 5x5 folded into Linear
    wr = w_rc1 * Wp                                         # right 1x1 folded into Linear
    wx = Wp                                                 # residual path

    bias = np.zeros((1, OUT_PAD), np.float64)
    bias[0, :OUT_DIM] = np.asarray(blin, np.float64)
    bias += (b_l5 + b_rc1) * Wp.sum(axis=0, keepdims=True)  # folded conv biases

    bf16 = lambda a: jnp.asarray(a, jnp.bfloat16)
    return (sp, bf16(al3), bf16(ar5), bf16(ar3),
            bf16(wl), bf16(wr), bf16(wx),
            jnp.asarray(bias, jnp.float32))


# ---------------------------------------------------------------------------
# Wrapper
# ---------------------------------------------------------------------------
def rene_trial_block(x, kparams, *, block_b=1024):
    """x: (B, rnn_hid_dim*2) f32; returns (B, output_dim) f32."""
    sp, al3, ar5, ar3, wl, wr, wx, bias = kparams
    B = x.shape[0]
    x = x.astype(jnp.float32)

    # Batch tile: multiple of 16 rows (native bf16 (16,128) sublane layout),
    # large by default to amortize per-grid-step overhead.
    TB = min(block_b, _round_up(max(B, 1), 16))
    # For batches big enough to split, guarantee >= 2 grid steps so the
    # "parallel" axis keeps both v7x TensorCores busy (no-op on v5e/v6e).
    if B > 32:
        TB = min(TB, _round_up((B + 1) // 2, 16))
    B_pad = _round_up(B, TB)
    if B_pad != B:
        x = jnp.pad(x, ((0, B_pad - B), (0, 0)))

    out = pl.pallas_call(
        _rene_kernel,
        out_shape=jax.ShapeDtypeStruct((B_pad, OUT_PAD), jnp.float32),
        grid=(B_pad // TB,),
        in_specs=[
            pl.BlockSpec(memory_space=pltpu.MemorySpace.SMEM),        # folded scalars
            pl.BlockSpec((TB, FEATURES), lambda i: (i, 0)),           # batch tile (f32)
            pl.BlockSpec((FEATURES, FEATURES), lambda i: (0, 0)),     # left DS 3x3 op (bf16)
            pl.BlockSpec((FEATURES, FEATURES), lambda i: (0, 0)),     # right 5x5 op (bf16)
            pl.BlockSpec((FEATURES, FEATURES), lambda i: (0, 0)),     # right DS 3x3 op (bf16)
            pl.BlockSpec((FEATURES, OUT_PAD), lambda i: (0, 0)),      # AL5 @ W (bf16)
            pl.BlockSpec((FEATURES, OUT_PAD), lambda i: (0, 0)),      # w_rc1 * W (bf16)
            pl.BlockSpec((FEATURES, OUT_PAD), lambda i: (0, 0)),      # W (residual, bf16)
            pl.BlockSpec((1, OUT_PAD), lambda i: (0, 0)),             # fused bias (f32)
        ],
        out_specs=pl.BlockSpec((TB, OUT_PAD), lambda i: (i, 0)),
        compiler_params=pltpu.CompilerParams(
            dimension_semantics=("parallel",)),
    )(sp, x, al3, ar5, ar3, wl, wr, wx, bias)

    return out[:B, :OUT_DIM]


# ---------------------------------------------------------------------------
# Deterministic parameter initialization (shapes from the module's __init__).
# ---------------------------------------------------------------------------
def init_params(key):
    keys = jax.random.split(key, len(_PARAM_LAYOUT) + 2)
    pieces = []
    for (name, n), k in zip(_PARAM_LAYOUT, keys[:len(_PARAM_LAYOUT)]):
        if name.endswith("bn1") or name.endswith("bn2"):
            kg, kb, km, kv = jax.random.split(k, 4)
            gamma = jax.random.uniform(kg, (1,), minval=0.5, maxval=1.5)
            beta = 0.1 * jax.random.normal(kb, (1,))
            mean = 0.1 * jax.random.normal(km, (1,))
            var = jax.random.uniform(kv, (1,), minval=0.5, maxval=1.5)
            pieces.append(jnp.concatenate([gamma, beta, mean, var]))
        else:
            bound = 1.0 / math.sqrt(max(n, 1))
            pieces.append(jax.random.uniform(k, (n,), minval=-bound, maxval=bound))
    scalar_params = jnp.concatenate(pieces).astype(jnp.float32)
    assert scalar_params.shape[0] == N_SCALARS

    kw, kb = keys[-2], keys[-1]
    fan_in = FEATURES
    bound = 1.0 / math.sqrt(fan_in)
    wlin = jax.random.uniform(kw, (OUT_DIM, fan_in), minval=-bound, maxval=bound,
                              dtype=jnp.float32)
    blin = jax.random.uniform(kb, (OUT_DIM,), minval=-bound, maxval=bound,
                              dtype=jnp.float32)
    return scalar_params, wlin, blin


# ---------------------------------------------------------------------------
# Pure-JAX reference (exact-erf GELU, f32 math) — correctness checking only.
# ---------------------------------------------------------------------------
def _conv2d_ref(x_bhw, w_kk, bias, pad):
    lhs = x_bhw[:, None, :, :]
    rhs = w_kk[None, None, :, :]
    out = lax.conv_general_dilated(lhs, rhs, (1, 1),
                                   [(pad, pad), (pad, pad)],
                                   dimension_numbers=("NCHW", "OIHW", "NCHW"))
    return out[:, 0] + bias


def reference(x, p, wlin, blin):
    B = x.shape[0]
    H = W = FEATURE_SIZE
    xf = x.reshape(B, H, W).astype(jnp.float32)
    gelu = lambda z: jax.nn.gelu(z, approximate=False)

    def bn(z, name):
        g, b, m, v = (p[OFF[name]], p[OFF[name] + 1],
                      p[OFF[name] + 2], p[OFF[name] + 3])
        return g * (z - m) / jnp.sqrt(v + BN_EPS) + b

    def k(name, n):
        return p[OFF[name]:OFF[name] + n]

    l = xf * p[OFF["l_c1_w"]] + p[OFF["l_c1_b"]]
    l = gelu(bn(l, "l_bn1"))
    l = _conv2d_ref(l, k("l_dw_w", 9).reshape(3, 3), p[OFF["l_dw_b"]], 1)
    l = l * p[OFF["l_pw_w"]] + p[OFF["l_pw_b"]]
    l = gelu(bn(l, "l_bn2"))
    l = _conv2d_ref(l, k("l_c5_w", 25).reshape(5, 5), p[OFF["l_c5_b"]], 2)

    r = _conv2d_ref(xf, k("r_c5_w", 25).reshape(5, 5), p[OFF["r_c5_b"]], 2)
    r = gelu(bn(r, "r_bn1"))
    r = _conv2d_ref(r, k("r_dw_w", 9).reshape(3, 3), p[OFF["r_dw_b"]], 1)
    r = r * p[OFF["r_pw_w"]] + p[OFF["r_pw_b"]]
    r = gelu(bn(r, "r_bn2"))
    r = r * p[OFF["r_c1_w"]] + p[OFF["r_c1_b"]]

    out = l + r + xf
    return out.reshape(B, -1) @ wlin.T + blin


if __name__ == "__main__":
    key = jax.random.PRNGKey(0)
    kx, kp = jax.random.split(key)
    B = 2
    x = jax.random.normal(kx, (B, FEATURES), dtype=jnp.float32)

    scalar_params, wlin, blin = init_params(kp)
    kparams = prepare_kernel_params(scalar_params, wlin, blin)

    y = rene_trial_block(x, kparams)
    y = jax.block_until_ready(y)

    # Tolerance loosened (vs the f32 version) for bf16 matmul inputs and
    # tanh-approx GELU; expected deviation is a few 1e-3 absolute.
    y_ref = reference(x, scalar_params, wlin, blin)
    np.testing.assert_allclose(np.asarray(y), np.asarray(y_ref),
                               rtol=1e-2, atol=1e-2)
    print("KERNEL_OK")
</pallas_src>

<mosaic_0001>
module attributes {stable_mosaic.version = 11 : i64} {
  func.func @_rene_kernel(%arg0: i32, %arg1: memref<5xf32, #tpu.memory_space<smem>>, %arg2: memref<16x256xf32, #tpu.memory_space<vmem>>, %arg3: memref<256x256xbf16, #tpu.memory_space<vmem>>, %arg4: memref<256x256xbf16, #tpu.memory_space<vmem>>, %arg5: memref<256x256xbf16, #tpu.memory_space<vmem>>, %arg6: memref<256x128xbf16, #tpu.memory_space<vmem>>, %arg7: memref<256x128xbf16, #tpu.memory_space<vmem>>, %arg8: memref<256x128xbf16, #tpu.memory_space<vmem>>, %arg9: memref<1x128xf32, #tpu.memory_space<vmem>>, %arg10: memref<16x128xf32, #tpu.memory_space<vmem>>) attributes {dimension_semantics = [#tpu.dimension_semantics<parallel>], iteration_bounds = array<i64: 1>, scalar_prefetch = 0 : i64, scratch_operands = 0 : i64, tpu.core_type = #tpu.core_type<tc>, window_params = [{transform_indices = @transform_0, window_bounds = array<i64: 5>}, {transform_indices = @transform_1, window_bounds = array<i64: 16, 256>}, {pipeline_mode = #tpu.pipeline_mode<synchronous>, transform_indices = @transform_2, window_bounds = array<i64: 256, 256>}, {pipeline_mode = #tpu.pipeline_mode<synchronous>, transform_indices = @transform_3, window_bounds = array<i64: 256, 256>}, {pipeline_mode = #tpu.pipeline_mode<synchronous>, transform_indices = @transform_4, window_bounds = array<i64: 256, 256>}, {pipeline_mode = #tpu.pipeline_mode<synchronous>, transform_indices = @transform_5, window_bounds = array<i64: 256, 128>}, {pipeline_mode = #tpu.pipeline_mode<synchronous>, transform_indices = @transform_6, window_bounds = array<i64: 256, 128>}, {pipeline_mode = #tpu.pipeline_mode<synchronous>, transform_indices = @transform_7, window_bounds = array<i64: 256, 128>}, {pipeline_mode = #tpu.pipeline_mode<synchronous>, transform_indices = @transform_8, window_bounds = array<i64: 1, 128>}, {transform_indices = @transform_9, window_bounds = array<i64: 16, 128>}]} {
    %c0 = arith.constant 0 : index
    %c0_0 = arith.constant 0 : index
    %0 = vector.load %arg2[%c0, %c0_0] : memref<16x256xf32, #tpu.memory_space<vmem>>, vector<16x256xf32>
    %1 = arith.truncf %0 : vector<16x256xf32> to vector<16x256xbf16>
    %c0_1 = arith.constant 0 : index
    %2 = memref.load %arg1[%c0_1] : memref<5xf32, #tpu.memory_space<smem>>
    %3 = vector.broadcast %2 : f32 to vector<16x256xf32>
    %4 = arith.mulf %0, %3 : vector<16x256xf32>
    %c1 = arith.constant 1 : index
    %5 = memref.load %arg1[%c1] : memref<5xf32, #tpu.memory_space<smem>>
    %6 = vector.broadcast %5 : f32 to vector<16x256xf32>
    %7 = arith.addf %4, %6 : vector<16x256xf32>
    %8 = arith.mulf %7, %7 : vector<16x256xf32>
    %cst = arith.constant 0.0356774069 : f32
    %9 = vector.broadcast %cst : f32 to vector<16x256xf32>
    %10 = arith.mulf %9, %8 : vector<16x256xf32>
    %cst_2 = arith.constant 0.797884583 : f32
    %11 = vector.broadcast %cst_2 : f32 to vector<16x256xf32>
    %12 = arith.addf %11, %10 : vector<16x256xf32>
    %13 = arith.mulf %7, %12 : vector<16x256xf32>
    %cst_3 = arith.constant 5.000000e-01 : f32
    %14 = vector.broadcast %cst_3 : f32 to vector<16x256xf32>
    %15 = arith.mulf %14, %7 : vector<16x256xf32>
    %16 = math.tanh %13 : vector<16x256xf32>
    %17 = arith.mulf %15, %16 : vector<16x256xf32>
    %18 = arith.addf %15, %17 : vector<16x256xf32>
    %19 = arith.truncf %18 : vector<16x256xf32> to vector<16x256xbf16>
    %c0_4 = arith.constant 0 : index
    %c0_5 = arith.constant 0 : index
    %20 = vector.load %arg3[%c0_4, %c0_5] : memref<256x256xbf16, #tpu.memory_space<vmem>>, vector<256x256xbf16>
    %cst_6 = arith.constant dense<0.000000e+00> : vector<16x256xf32>
    %21 = tpu.matmul %19, %20, %cst_6 {dimension_numbers = #tpu.dot_dimension_numbers<[1], [0], [0], [1], [0, 0, 1, 1], [], []>} : vector<16x256xbf16>, vector<256x256xbf16>, vector<16x256xf32> -> vector<16x256xf32>
    %c2 = arith.constant 2 : index
    %22 = memref.load %arg1[%c2] : memref<5xf32, #tpu.memory_space<smem>>
    %23 = vector.broadcast %22 : f32 to vector<16x256xf32>
    %24 = arith.addf %21, %23 : vector<16x256xf32>
    %25 = arith.mulf %24, %24 : vector<16x256xf32>
    %cst_7 = arith.constant 0.0356774069 : f32
    %26 = vector.broadcast %cst_7 : f32 to vector<16x256xf32>
    %27 = arith.mulf %26, %25 : vector<16x256xf32>
    %cst_8 = arith.constant 0.797884583 : f32
    %28 = vector.broadcast %cst_8 : f32 to vector<16x256xf32>
    %29 = arith.addf %28, %27 : vector<16x256xf32>
    %30 = arith.mulf %24, %29 : vector<16x256xf32>
    %cst_9 = arith.constant 5.000000e-01 : f32
    %31 = vector.broadcast %cst_9 : f32 to vector<16x256xf32>
    %32 = arith.mulf %31, %24 : vector<16x256xf32>
    %33 = math.tanh %30 : vector<16x256xf32>
    %34 = arith.mulf %32, %33 : vector<16x256xf32>
    %35 = arith.addf %32, %34 : vector<16x256xf32>
    %c0_10 = arith.constant 0 : index
    %c0_11 = arith.constant 0 : index
    %36 = vector.load %arg4[%c0_10, %c0_11] : memref<256x256xbf16, #tpu.memory_space<vmem>>, vector<256x256xbf16>
    %cst_12 = arith.constant dense<0.000000e+00> : vector<16x256xf32>
    %37 = tpu.matmul %1, %36, %cst_12 {dimension_numbers = #tpu.dot_dimension_numbers<[1], [0], [0], [1], [0, 0, 1, 1], [], []>} : vector<16x256xbf16>, vector<256x256xbf16>, vector<16x256xf32> -> vector<16x256xf32>
    %c3 = arith.constant 3 : index
    %38 = memref.load %arg1[%c3] : memref<5xf32, #tpu.memory_space<smem>>
    %39 = vector.broadcast %38 : f32 to vector<16x256xf32>
    %40 = arith.addf %37, %39 : vector<16x256xf32>
    %41 = arith.mulf %40, %40 : vector<16x256xf32>
    %cst_13 = arith.constant 0.0356774069 : f32
    %42 = vector.broadcast %cst_13 : f32 to vector<16x256xf32>
    %43 = arith.mulf %42, %41 : vector<16x256xf32>
    %cst_14 = arith.constant 0.797884583 : f32
    %44 = vector.broadcast %cst_14 : f32 to vector<16x256xf32>
    %45 = arith.addf %44, %43 : vector<16x256xf32>
    %46 = arith.mulf %40, %45 : vector<16x256xf32>
    %cst_15 = arith.constant 5.000000e-01 : f32
    %47 = vector.broadcast %cst_15 : f32 to vector<16x256xf32>
    %48 = arith.mulf %47, %40 : vector<16x256xf32>
    %49 = math.tanh %46 : vector<16x256xf32>
    %50 = arith.mulf %48, %49 : vector<16x256xf32>
    %51 = arith.addf %48, %50 : vector<16x256xf32>
    %52 = arith.truncf %51 : vector<16x256xf32> to vector<16x256xbf16>
    %c0_16 = arith.constant 0 : index
    %c0_17 = arith.constant 0 : index
    %53 = vector.load %arg5[%c0_16, %c0_17] : memref<256x256xbf16, #tpu.memory_space<vmem>>, vector<256x256xbf16>
    %cst_18 = arith.constant dense<0.000000e+00> : vector<16x256xf32>
    %54 = tpu.matmul %52, %53, %cst_18 {dimension_numbers = #tpu.dot_dimension_numbers<[1], [0], [0], [1], [0, 0, 1, 1], [], []>} : vector<16x256xbf16>, vector<256x256xbf16>, vector<16x256xf32> -> vector<16x256xf32>
    %c4 = arith.constant 4 : index
    %55 = memref.load %arg1[%c4] : memref<5xf32, #tpu.memory_space<smem>>
    %56 = vector.broadcast %55 : f32 to vector<16x256xf32>
    %57 = arith.addf %54, %56 : vector<16x256xf32>
    %58 = arith.mulf %57, %57 : vector<16x256xf32>
    %cst_19 = arith.constant 0.0356774069 : f32
    %59 = vector.broadcast %cst_19 : f32 to vector<16x256xf32>
    %60 = arith.mulf %59, %58 : vector<16x256xf32>
    %cst_20 = arith.constant 0.797884583 : f32
    %61 = vector.broadcast %cst_20 : f32 to vector<16x256xf32>
    %62 = arith.addf %61, %60 : vector<16x256xf32>
    %63 = arith.mulf %57, %62 : vector<16x256xf32>
    %cst_21 = arith.constant 5.000000e-01 : f32
    %64 = vector.broadcast %cst_21 : f32 to vector<16x256xf32>
    %65 = arith.mulf %64, %57 : vector<16x256xf32>
    %66 = math.tanh %63 : vector<16x256xf32>
    %67 = arith.mulf %65, %66 : vector<16x256xf32>
    %68 = arith.addf %65, %67 : vector<16x256xf32>
    %69 = arith.truncf %35 : vector<16x256xf32> to vector<16x256xbf16>
    %c0_22 = arith.constant 0 : index
    %c0_23 = arith.constant 0 : index
    %70 = vector.load %arg6[%c0_22, %c0_23] : memref<256x128xbf16, #tpu.memory_space<vmem>>, vector<256x128xbf16>
    %cst_24 = arith.constant dense<0.000000e+00> : vector<16x128xf32>
    %71 = tpu.matmul %69, %70, %cst_24 {dimension_numbers = #tpu.dot_dimension_numbers<[1], [0], [0], [1], [0, 0, 1, 1], [], []>} : vector<16x256xbf16>, vector<256x128xbf16>, vector<16x128xf32> -> vector<16x128xf32>
    %72 = arith.truncf %68 : vector<16x256xf32> to vector<16x256xbf16>
    %c0_25 = arith.constant 0 : index
    %c0_26 = arith.constant 0 : index
    %73 = vector.load %arg7[%c0_25, %c0_26] : memref<256x128xbf16, #tpu.memory_space<vmem>>, vector<256x128xbf16>
    %cst_27 = arith.constant dense<0.000000e+00> : vector<16x128xf32>
    %74 = tpu.matmul %72, %73, %cst_27 {dimension_numbers = #tpu.dot_dimension_numbers<[1], [0], [0], [1], [0, 0, 1, 1], [], []>} : vector<16x256xbf16>, vector<256x128xbf16>, vector<16x128xf32> -> vector<16x128xf32>
    %75 = arith.addf %71, %74 : vector<16x128xf32>
    %c0_28 = arith.constant 0 : index
    %c0_29 = arith.constant 0 : index
    %76 = vector.load %arg8[%c0_28, %c0_29] : memref<256x128xbf16, #tpu.memory_space<vmem>>, vector<256x128xbf16>
    %cst_30 = arith.constant dense<0.000000e+00> : vector<16x128xf32>
    %77 = tpu.matmul %1, %76, %cst_30 {dimension_numbers = #tpu.dot_dimension_numbers<[1], [0], [0], [1], [0, 0, 1, 1], [], []>} : vector<16x256xbf16>, vector<256x128xbf16>, vector<16x128xf32> -> vector<16x128xf32>
    %78 = arith.addf %75, %77 : vector<16x128xf32>
    %c0_31 = arith.constant 0 : index
    %c0_32 = arith.constant 0 : index
    %79 = vector.load %arg9[%c0_31, %c0_32] : memref<1x128xf32, #tpu.memory_space<vmem>>, vector<1x128xf32>
    %80 = vector.broadcast %79 : vector<1x128xf32> to vector<16x128xf32>
    %81 = arith.addf %78, %80 : vector<16x128xf32>
    %c0_33 = arith.constant 0 : index
    %c0_34 = arith.constant 0 : index
    %82 = vector.load %arg10[%c0_33, %c0_34] : memref<16x128xf32, #tpu.memory_space<vmem>>, vector<16x128xf32>
    tpu.vector_store %arg10[%c0_33, %c0_34], %81 {strides = array<i32>} : memref<16x128xf32, #tpu.memory_space<vmem>>, vector<16x128xf32>,
    return
  }
  func.func @transform_0(%arg0: i32) -> i32 {
    %c0_i32 = arith.constant 0 : i32
    %c0_i32_0 = arith.constant 0 : i32
    return %c0_i32 : i32
  }
  func.func @transform_1(%arg0: i32) -> (i32, i32) {
    %c0_i32 = arith.constant 0 : i32
    %c0_i32_0 = arith.constant 0 : i32
    return %arg0, %c0_i32 : i32, i32
  }
  func.func @transform_2(%arg0: i32) -> (i32, i32) {
    %c0_i32 = arith.constant 0 : i32
    %c0_i32_0 = arith.constant 0 : i32
    %c0_i32_1 = arith.constant 0 : i32
    return %c0_i32, %c0_i32_0 : i32, i32
  }
  func.func @transform_3(%arg0: i32) -> (i32, i32) {
    %c0_i32 = arith.constant 0 : i32
    %c0_i32_0 = arith.constant 0 : i32
    %c0_i32_1 = arith.constant 0 : i32
    return %c0_i32, %c0_i32_0 : i32, i32
  }
  func.func @transform_4(%arg0: i32) -> (i32, i32) {
    %c0_i32 = arith.constant 0 : i32
    %c0_i32_0 = arith.constant 0 : i32
    %c0_i32_1 = arith.constant 0 : i32
    return %c0_i32, %c0_i32_0 : i32, i32
  }
  func.func @transform_5(%arg0: i32) -> (i32, i32) {
    %c0_i32 = arith.constant 0 : i32
    %c0_i32_0 = arith.constant 0 : i32
    %c0_i32_1 = arith.constant 0 : i32
    return %c0_i32, %c0_i32_0 : i32, i32
  }
  func.func @transform_6(%arg0: i32) -> (i32, i32) {
    %c0_i32 = arith.constant 0 : i32
    %c0_i32_0 = arith.constant 0 : i32
    %c0_i32_1 = arith.constant 0 : i32
    return %c0_i32, %c0_i32_0 : i32, i32
  }
  func.func @transform_7(%arg0: i32) -> (i32, i32) {
    %c0_i32 = arith.constant 0 : i32
    %c0_i32_0 = arith.constant 0 : i32
    %c0_i32_1 = arith.constant 0 : i32
    return %c0_i32, %c0_i32_0 : i32, i32
  }
  func.func @transform_8(%arg0: i32) -> (i32, i32) {
    %c0_i32 = arith.constant 0 : i32
    %c0_i32_0 = arith.constant 0 : i32
    %c0_i32_1 = arith.constant 0 : i32
    return %c0_i32, %c0_i32_0 : i32, i32
  }
  func.func @transform_9(%arg0: i32) -> (i32, i32) {
    %c0_i32 = arith.constant 0 : i32
    %c0_i32_0 = arith.constant 0 : i32
    return %arg0, %c0_i32 : i32, i32
  }
}

</mosaic_0001>

<bundles_post_ra>
// kernel: tpu_custom_call.1
= control target key start
LH: loop header
LB: loop body
LE: loop exit
PB: predicated region body
PF: predicated region fallthrough
CT: control target
= control target key end

     0   :  { %14 = vsyncpa [#allocation5], 0  ;;  %s2441_s0 = inlined_call_operand.hbm [shape: f32[5], index: 0, kind: input, shape index: {}]   ;;  %s2442_s1 = inlined_call_operand.hbm [shape: f32[16,256], index: 1, kind: input, shape index: {}]   ;;  %s2443_s2 = inlined_call_operand.hbm [shape: bf16[256,256], index: 2, kind: input, shape index: {}]   ;;  %s2444_s3 = inlined_call_operand.hbm [shape: bf16[256,256], index: 3, kind: input, shape index: {}]   ;;  %s2445_s4 = inlined_call_operand.hbm [shape: bf16[256,256], index: 4, kind: input, shape index: {}]   ;;  %s2446_s5 = inlined_call_operand.hbm [shape: bf16[256,128], index: 5, kind: input, shape index: {}]   ;;  %s2447_s6 = inlined_call_operand.hbm [shape: bf16[256,128], index: 6, kind: input, shape index: {}]   ;;  %s2448_s7 = inlined_call_operand.hbm [shape: bf16[256,128], index: 7, kind: input, shape index: {}]   ;;  %s2449_s8 = inlined_call_operand.vmem [shape: f32[1,128], index: 8, kind: input, shape index: {}]   ;;  %s2450_s9 = inlined_call_operand.hbm [shape: f32[16,128], index: 9, kind: output, shape index: {}]  }
   0x1   :  { %15 = vsyncpa [#allocation3], 0 }
   0x2   :  { %16 = vsyncpa [#allocation8], 0 }
   0x3   :  { %17 = vsyncpa [#allocation11], 0 }
   0x4   :  { %18 = vsyncpa [#allocation14], 0 }
   0x5   :  { %19 = vsyncpa [#allocation4], 0  ;;  %s2198_s30 = smov [#allocation7]   ;;  %s2000_s13 = scalar_lea.hbm %s2443_s2, 4096 }
   0x6   :  { %s45_s10 = sshll.u32 %s2198_s30, 4  ;;  %p2001_p0 = scmp.ne.s32.totalorder %s2443_s2, %s2000_s13  ;;  %s46_s10 = int_to_ptr.vmem [resolvable:$true] %s45_s10 }
   0x7   :  { %p2004_p1 = scmp.lt.u32.totalorder %s2000_s13, %s2443_s2 }
   0x9   :  { %p2006_p2 = pnand %p2004_p1, %p2001_p0 }
   0xb   :  { %2009 = shalt.err (!%p2006_p2)
}
   0xc   :  { %s2010_s18 = scalar_lea.vmem %s46_s10, 4096  ;;  %p2015_p4 = scmp.lt.s32.totalorder %s46_s10, %s46_s10 }
   0xd   :  { %p2011_p3 = scmp.ne.s32.totalorder %s46_s10, %s2010_s18  ;;  %p2016_p5 = scmp.lt.s32.totalorder %s2010_s18, %s2010_s18 }
   0xf   :  { %p2017_p6 = por %p2016_p5, %p2015_p4 }
  0x11   :  { %p2018_p7 = pnand %p2017_p6, %p2011_p3 }
  0x13   :  { %2021 = shalt.err (!%p2018_p7)
}
  0x14   :  { %s2199_s19 = smov 128   ;;  %s2200_s20 = smov 8  }
  0x15   :  { %51 = dma.hbm_to_vmem [thread:$0]  %s2443_s2, 4096, %s46_s10, [#allocation8], %s2199_s19, %s2199_s19, %s2200_s20  }
  0x16   :  { %s2201_s23 = smov [#allocation10]   ;;  %s2022_s27 = scalar_lea.hbm %s2445_s4, 4096 }
  0x17   :  { %s69_s24 = sshll.u32 %s2201_s23, 4  ;;  %p2023_p8 = scmp.ne.s32.totalorder %s2445_s4, %s2022_s27  ;;  %s70_s24 = int_to_ptr.vmem [resolvable:$true] %s69_s24 }
  0x18   :  { %p2026_p9 = scmp.lt.u32.totalorder %s2022_s27, %s2445_s4 }
  0x1a   :  { %p2028_p10 = pnand %p2026_p9, %p2023_p8 }
  0x1c   :  { %2031 = shalt.err (!%p2028_p10)
}
  0x1d   :  { %s2032_s12 = scalar_lea.vmem %s70_s24, 4096  ;;  %p2037_p12 = scmp.lt.s32.totalorder %s70_s24, %s70_s24 }
  0x1e   :  { %p2033_p11 = scmp.ne.s32.totalorder %s70_s24, %s2032_s12  ;;  %p2038_p13 = scmp.lt.s32.totalorder %s2032_s12, %s2032_s12 }
  0x20   :  { %p2039_p0 = por %p2038_p13, %p2037_p12 }
  0x22   :  { %p2040_p1 = pnand %p2039_p0, %p2033_p11 }
  0x24   :  { %2043 = shalt.err (!%p2040_p1)
}
  0x25   :  { %75 = dma.hbm_to_vmem [thread:$0]  %s2445_s4, 4096, %s70_s24, [#allocation11], %s2199_s19, %s2199_s19, %s2200_s20  }
  0x26   :  { %s2202_s13 = smov [#allocation13]   ;;  %s2203_s15 = smov [#allocation6]  }
  0x27   :  { %s93_s14 = sshll.u32 %s2202_s13, 4  ;;  %s33_s16 = sshll.u32 %s2203_s15, 4  ;;  %s94_s14 = int_to_ptr.vmem [resolvable:$true] %s93_s14  ;;  %s34_s16 = int_to_ptr.vmem [resolvable:$true] %s33_s16 }
  0x28   :  { %s2044_s21 = scalar_lea.hbm %s2447_s6, 2048 }
  0x29   :  { %p2045_p2 = scmp.ne.s32.totalorder %s2447_s6, %s2044_s21  ;;  %p2048_p3 = scmp.lt.u32.totalorder %s2044_s21, %s2447_s6 }
  0x2b   :  { %p2050_p4 = pnand %p2048_p3, %p2045_p2 }
  0x2d   :  { %2053 = shalt.err (!%p2050_p4)
}
  0x2e   :  { %s2054_s4 = scalar_lea.vmem %s94_s14, 2048  ;;  %p2059_p6 = scmp.lt.s32.totalorder %s94_s14, %s94_s14 }
  0x2f   :  { %p2055_p5 = scmp.ne.s32.totalorder %s94_s14, %s2054_s4  ;;  %p2060_p7 = scmp.lt.s32.totalorder %s2054_s4, %s2054_s4 }
  0x31   :  { %p2061_p8 = por %p2060_p7, %p2059_p6 }
  0x33   :  { %p2062_p9 = pnand %p2061_p8, %p2055_p5 }
  0x35   :  { %2065 = shalt.err (!%p2062_p9)
}
  0x36   :  { %s2204_s24 = smov 64   ;;  %s2205_s27 = smov 4  }
  0x37   :  { %99 = dma.hbm_to_vmem [thread:$0]  %s2447_s6, 2048, %s94_s14, [#allocation14], %s2204_s24, %s2204_s24, %s2205_s27  }
  0x38   :  { %s2066_s12 = scalar_lea.hbm %s2441_s0, 16 }
  0x39   :  { %p2067_p10 = scmp.ne.s32.totalorder %s2441_s0, %s2066_s12  ;;  %p2070_p11 = scmp.lt.u32.totalorder %s2066_s12, %s2441_s0 }
  0x3b   :  { %p2072_p12 = pnand %p2070_p11, %p2067_p10 }
  0x3d   :  { %2075 = shalt.err (!%p2072_p12)
}
  0x3e   :  { %s2206_s17 = smov [#allocation2]   ;;  %s2076_s22 = scalar_lea.hbm %s2442_s1, 512 }
  0x3f   :  { %27 = dma.hbm_to_smem %s2441_s0, 16, %s2206_s17, [#allocation5]  }
  0x40   :  { %p2077_p13 = scmp.ne.s32.totalorder %s2442_s1, %s2076_s22  ;;  %p2080_p0 = scmp.lt.u32.totalorder %s2076_s22, %s2442_s1 }
  0x42   :  { %p2082_p1 = pnand %p2080_p0, %p2077_p13 }
  0x44   :  { %2085 = shalt.err (!%p2082_p1)
}
  0x45   :  { %s2086_s28 = scalar_lea.vmem %s34_s16, 512  ;;  %p2091_p3 = scmp.lt.s32.totalorder %s34_s16, %s34_s16 }
  0x46   :  { %p2087_p2 = scmp.ne.s32.totalorder %s34_s16, %s2086_s28  ;;  %p2092_p4 = scmp.lt.s32.totalorder %s2086_s28, %s2086_s28 }
  0x48   :  { %p2093_p5 = por %p2092_p4, %p2091_p3 }
  0x4a   :  { %p2094_p6 = pnand %p2093_p5, %p2087_p2 }
  0x4c   :  { %2097 = shalt.err (!%p2094_p6)
}
  0x4d   :  { %s2207_s0 = smov 256   ;;  %s2208_s29 = smov 16  }
  0x4e   :  { %39 = dma.hbm_to_vmem [thread:$0]  %s2442_s1, 512, %s34_s16, [#allocation3], %s2207_s0, %s2207_s0, %s2208_s29  }
  0x4f   :  { %s2209_s12 = smov [#allocation9]   ;;  %s2210_s10 = smov [#allocation12]  }
  0x50   :  { %s57_s2 = sshll.u32 %s2209_s12, 4  ;;  %s81_s13 = sshll.u32 %s2210_s10, 4  ;;  %s58_s2 = int_to_ptr.vmem [resolvable:$true] %s57_s2  ;;  %s82_s13 = int_to_ptr.vmem [resolvable:$true] %s81_s13 }
  0x51   :  { %s2098_s18 = scalar_lea.hbm %s2444_s3, 4096 }
  0x52   :  { %p2099_p7 = scmp.ne.s32.totalorder %s2444_s3, %s2098_s18  ;;  %p2102_p8 = scmp.lt.u32.totalorder %s2098_s18, %s2444_s3 }
  0x54   :  { %p2104_p9 = pnand %p2102_p8, %p2099_p7 }
  0x56   :  { %2107 = shalt.err (!%p2104_p9)
}
  0x57   :  { %s2108_s1 = scalar_lea.vmem %s58_s2, 4096  ;;  %p2113_p11 = scmp.lt.s32.totalorder %s58_s2, %s58_s2 }
  0x58   :  { %p2109_p10 = scmp.ne.s32.totalorder %s58_s2, %s2108_s1  ;;  %p2114_p12 = scmp.lt.s32.totalorder %s2108_s1, %s2108_s1 }
  0x5a   :  { %p2115_p13 = por %p2114_p12, %p2113_p11 }
  0x5c   :  { %p2116_p0 = pnand %p2115_p13, %p2109_p10 }
  0x5e   :  { %2119 = shalt.err (!%p2116_p0)
}
  0x5f   :  { %63 = dma.hbm_to_vmem [thread:$0]  %s2444_s3, 4096, %s58_s2, [#allocation8], %s2199_s19, %s2199_s19, %s2200_s20  }
  0x60   :  { %s2120_s4 = scalar_lea.hbm %s2446_s5, 2048 }
  0x61   :  { %p2121_p1 = scmp.ne.s32.totalorder %s2446_s5, %s2120_s4  ;;  %p2124_p2 = scmp.lt.u32.totalorder %s2120_s4, %s2446_s5 }
  0x63   :  { %p2126_p3 = pnand %p2124_p2, %p2121_p1 }
  0x65   :  { %2129 = shalt.err (!%p2126_p3)
}
  0x66   :  { %s2130_s11 = scalar_lea.vmem %s82_s13, 2048  ;;  %p2135_p5 = scmp.lt.s32.totalorder %s82_s13, %s82_s13 }
  0x67   :  { %p2131_p4 = scmp.ne.s32.totalorder %s82_s13, %s2130_s11  ;;  %p2136_p6 = scmp.lt.s32.totalorder %s2130_s11, %s2130_s11 }
  0x69   :  { %p2137_p7 = por %p2136_p6, %p2135_p5 }
  0x6b   :  { %p2138_p8 = pnand %p2137_p7, %p2131_p4 }
  0x6d   :  { %2141 = shalt.err (!%p2138_p8)
}
  0x6e   :  { %87 = dma.hbm_to_vmem [thread:$0]  %s2446_s5, 2048, %s82_s13, [#allocation11], %s2204_s24, %s2204_s24, %s2205_s27  }
  0x6f   :  { %s2211_s2 = smov [#allocation15]   ;;  %s2142_s18 = scalar_lea.hbm %s2448_s7, 2048 }
  0x70   :  { %s105_s10 = sshll.u32 %s2211_s2, 4  ;;  %p2143_p9 = scmp.ne.s32.totalorder %s2448_s7, %s2142_s18  ;;  %s106_s10 = int_to_ptr.vmem [resolvable:$true] %s105_s10 }
  0x71   :  { %p2146_p10 = scmp.lt.u32.totalorder %s2142_s18, %s2448_s7 }
  0x73   :  { %p2148_p11 = pnand %p2146_p10, %p2143_p9 }
  0x75   :  { %2151 = shalt.err (!%p2148_p11)
}
  0x76   :  { %s2152_s1 = scalar_lea.vmem %s106_s10, 2048  ;;  %p2157_p13 = scmp.lt.s32.totalorder %s106_s10, %s106_s10 }
  0x77   :  { %p2153_p12 = scmp.ne.s32.totalorder %s106_s10, %s2152_s1  ;;  %p2158_p0 = scmp.lt.s32.totalorder %s2152_s1, %s2152_s1 }
  0x79   :  { %p2159_p1 = por %p2158_p0, %p2157_p13 }
  0x7b   :  { %p2160_p2 = pnand %p2159_p1, %p2153_p12 }
  0x7d   :  { %2163 = shalt.err (!%p2160_p2)
}
  0x7e   :  { %111 = dma.hbm_to_vmem [thread:$0]  %s2448_s7, 2048, %s106_s10, [#allocation14], %s2204_s24, %s2204_s24, %s2205_s27  }
  0x7f   :  { %2186 = dma.done.wait [#allocation5], 16  }
  0x80   :  { %2187 = vsyncadd [#allocation5], 4294967280 }
  0x81   :  { %2188 = dma.done.wait [#allocation3], 512  }
  0x82   :  { %2189 = vsyncadd [#allocation3], 4294966784 }
  0x83   :  { %2190 = dma.done.wait [#allocation8], 8192  }
  0x84   :  { %2191 = vsyncadd [#allocation8], 4294959104 }
  0x85   :  { %2192 = dma.done.wait [#allocation11], 6144  }
  0x86   :  { %2193 = vsyncadd [#allocation11], 4294961152 }
  0x87   :  { %2194 = dma.done.wait [#allocation14], 4096  }
  0x88   :  { %2195 = vsyncadd [#allocation14], 4294963200 }
  0x89   :  { %138 = sfence }
  0x8a   :  { %v1776_v0 = vld [vmem:[#allocation9 + $0x4] ss:$8 sps:$4 sm:$0xff]   ;;  %v1778_v1 = vld [vmem:[#allocation9] ss:$8 sps:$4 sm:$0xff]   ;;  %v1779_v2 = vld [vmem:[#allocation9 + $0x14] ss:$8 sps:$4 sm:$0xff]  }
  0x8b   :  { %655 = vmatprep.subr.bf16.mxu1 %v1776_v0  ;;  %v1781_v3 = vld [vmem:[#allocation9 + $0x10] ss:$8 sps:$4 sm:$0xff]   ;;  %v1782_v4 = vld [vmem:[#allocation9 + $0x24] ss:$8 sps:$4 sm:$0xff]   ;;  %v1784_v5 = vld [vmem:[#allocation9 + $0x20] ss:$8 sps:$4 sm:$0xff]  }
  0x8c   :  { %656 = vmatpush1.bf16.msra.mxu1 %v1778_v1  ;;  %v1785_v6 = vld [vmem:[#allocation9 + $0x34] ss:$8 sps:$4 sm:$0xff]   ;;  %v1787_v7 = vld [vmem:[#allocation9 + $0x30] ss:$8 sps:$4 sm:$0xff]   ;;  %s146_s7 = sld [smem:[#allocation2]]  ;;  %s1546_s24 = sld [smem:[#allocation2 + $0x1]] }
  0x8d   :  { %657 = vmatprep.subr.bf16.mxu1 %v1779_v2  ;;  %v1788_v8 = vld [vmem:[#allocation9 + $0x44] ss:$8 sps:$4 sm:$0xff]   ;;  %v1790_v9 = vld [vmem:[#allocation9 + $0x40] ss:$8 sps:$4 sm:$0xff]   ;;  %v1791_v10 = vld [vmem:[#allocation9 + $0x54] ss:$8 sps:$4 sm:$0xff]  }
  0x8e   :  { %v1793_v11 = vld [vmem:[#allocation9 + $0x50] ss:$8 sps:$4 sm:$0xff]   ;;  %v1794_v13 = vld [vmem:[#allocation9 + $0x64] ss:$8 sps:$4 sm:$0xff]   ;;  %v1796_v17 = vld [vmem:[#allocation9 + $0x60] ss:$8 sps:$4 sm:$0xff]  }
  0x8f   :  { %v141_v14 = vld [vmem:[#allocation6 + $0x8] sm:$0xff]  ;;  %v143_v15 = vld [vmem:[#allocation6 + $0x18] sm:$0xff]  ;;  %v2388_v48 = vld [vmem:[#allocation6] sm:$0xff]  ;;  %s1580_s27 = sld [smem:[#allocation2 + $0x3]]  ;;  %s1547_s16 = sld [smem:[#allocation2 + $0x2]] }
  0x90   :  { %658 = vmatpush1.bf16.msra.mxu1 %v1781_v3  ;;  %v1797_v18 = vld [vmem:[#allocation9 + $0x74] ss:$8 sps:$4 sm:$0xff]   ;;  %v2381_v19 = vpack.c.bf16 %v143_v15, %v141_v14  ;;  %v1824_v22 = vld [vmem:[#allocation7 + $0x4] ss:$8 sps:$4 sm:$0xff]   ;;  %v1826_v23 = vld [vmem:[#allocation7] ss:$8 sps:$4 sm:$0xff]  }
  0x91   :  { %659 = vmatprep.subr.bf16.mxu1 %v1782_v4  ;;  %v1827_v26 = vld [vmem:[#allocation7 + $0x14] ss:$8 sps:$4 sm:$0xff]   ;;  %386 = vmatprep.subr.bf16.mxu0 %v1824_v22  ;;  %v1799_v27 = vld [vmem:[#allocation9 + $0x70] ss:$8 sps:$4 sm:$0xff]   ;;  %v1800_v31 = vld [vmem:[#allocation9 + $0x84] ss:$8 sps:$4 sm:$0xff]  }
  0x92   :  { %v2377_v12 = vstv %s146_s7  ;;  %v2379_v16 = vstv %s1546_s24  ;;  %687 = vmatprep.mubr.bf16.mxu1 %v2381_v19  ;;  %387 = vmatpush1.bf16.msra.mxu0 %v1826_v23  ;;  %v1829_v30 = vld [vmem:[#allocation7 + $0x10] ss:$8 sps:$4 sm:$0xff]   ;;  %v1830_v32 = vld [vmem:[#allocation7 + $0x24] ss:$8 sps:$4 sm:$0xff]   ;;  %v1802_v35 = vld [vmem:[#allocation9 + $0x80] ss:$8 sps:$4 sm:$0xff]  }
  0x93   :  { %v149_v20 = vmul.f32 %v2377_v12, %v141_v14  ;;  %v151_v21 = vmul.f32 %v2377_v12, %v143_v15  ;;  %388 = vmatprep.subr.bf16.mxu0 %v1827_v26  ;;  %v1832_v38 = vld [vmem:[#allocation7 + $0x20] ss:$8 sps:$4 sm:$0xff]   ;;  %v1833_v39 = vld [vmem:[#allocation7 + $0x34] ss:$8 sps:$4 sm:$0xff]   ;;  %v1805_v43 = vld [vmem:[#allocation9 + $0x90] ss:$8 sps:$4 sm:$0xff]   ;;  %v148_v51 = vmul.f32 %v2377_v12, %v2388_v48 }
  0x94   :  { %660 = vmatpush1.bf16.msra.mxu1 %v1784_v5  ;;  %v1803_v40 = vld [vmem:[#allocation9 + $0x94] ss:$8 sps:$4 sm:$0xff]   ;;  %v1835_v44 = vld [vmem:[#allocation7 + $0x30] ss:$8 sps:$4 sm:$0xff]   ;;  %v1836_v45 = vld [vmem:[#allocation7 + $0x44] ss:$8 sps:$4 sm:$0xff]  }
  0x95   :  { %661 = vmatprep.subr.bf16.mxu1 %v1785_v6  ;;  %v155_v24 = vadd.f32 %v2379_v16, %v149_v20  ;;  %v157_v25 = vadd.f32 %v2379_v16, %v151_v21  ;;  %v1806_v46 = vld [vmem:[#allocation9 + $0xa4] ss:$8 sps:$4 sm:$0xff]   ;;  %v1808_v47 = vld [vmem:[#allocation9 + $0xa0] ss:$8 sps:$4 sm:$0xff]   ;;  %v2390_v49 = vld [vmem:[#allocation6 + $0x10] sm:$0xff]  ;;  %v154_v59 = vadd.f32 %v2379_v16, %v148_v51  ;;  %s1613_s23 = sld [smem:[#allocation2 + $0x4]] }
  0x96   :  { %389 = vmatpush1.bf16.msra.mxu0 %v1829_v30  ;;  %v1838_v50 = vld [vmem:[#allocation7 + $0x40] ss:$8 sps:$4 sm:$0xff]   ;;  %v1839_v52 = vld [vmem:[#allocation7 + $0x54] ss:$8 sps:$4 sm:$0xff]   ;;  %v150_v54 = vmul.f32 %v2377_v12, %v2390_v49  ;;  %v1811_v55 = vld [vmem:[#allocation9 + $0xb0] ss:$8 sps:$4 sm:$0xff]  }
  0x97   :  { %v159_v28 = vmul.f32 %v155_v24, %v155_v24  ;;  %v161_v29 = vmul.f32 %v157_v25, %v157_v25  ;;  %390 = vmatprep.subr.bf16.mxu0 %v1830_v32  ;;  %v1809_v53 = vld [vmem:[#allocation9 + $0xb4] ss:$8 sps:$4 sm:$0xff]   ;;  %v175_v56 = vmul.f32 0.5, %v155_v24  ;;  %v1841_v57 = vld [vmem:[#allocation7 + $0x50] ss:$8 sps:$4 sm:$0xff]   ;;  %v177_v58 = vmul.f32 0.5, %v157_v25 }
  0x98   :  { %662 = vmatpush1.bf16.msra.mxu1 %v1787_v7  ;;  %v1842_v60 = vld [vmem:[#allocation7 + $0x64] ss:$8 sps:$4 sm:$0xff]   ;;  %v156_v63 = vadd.f32 %v2379_v16, %v150_v54  ;;  %v1814_v1 = vld [vmem:[#allocation9 + $0xc0] ss:$8 sps:$4 sm:$0xff]   ;;  %v158_v5 = vmul.f32 %v154_v59, %v154_v59  ;;  %v1845_v6 = vld [vmem:[#allocation7 + $0x74] ss:$8 sps:$4 sm:$0xff]  }
  0x99   :  { %663 = vmatprep.subr.bf16.mxu1 %v1788_v8  ;;  %v163_v33 = vmul.f32 0.035677407, %v159_v28  ;;  %v165_v34 = vmul.f32 0.035677407, %v161_v29  ;;  %v1812_v62 = vld [vmem:[#allocation9 + $0xc4] ss:$8 sps:$4 sm:$0xff]  }
  0x9a   :  { %391 = vmatpush1.bf16.msra.mxu0 %v1832_v38  ;;  %v1844_v3 = vld [vmem:[#allocation7 + $0x60] ss:$8 sps:$4 sm:$0xff]   ;;  %v1815_v8 = vld [vmem:[#allocation9 + $0xd4] ss:$8 sps:$4 sm:$0xff]   ;;  %v1847_v12 = vld [vmem:[#allocation7 + $0x70] ss:$8 sps:$4 sm:$0xff]  }
  0x9b   :  { %v167_v36 = vadd.f32 0.7978846, %v163_v33  ;;  %v169_v37 = vadd.f32 0.7978846, %v165_v34  ;;  %392 = vmatprep.subr.bf16.mxu0 %v1833_v39  ;;  %v162_v14 = vmul.f32 0.035677407, %v158_v5  ;;  %v2400_v34 = vpack.c.bf16 %v2390_v49, %v2388_v48 }
  0x9c   :  { %664 = vmatpush1.bf16.msra.mxu1 %v1790_v9  ;;  %v160_v9 = vmul.f32 %v156_v63, %v156_v63  ;;  %v1848_v15 = vld [vmem:[#allocation7 + $0x84] ss:$8 sps:$4 sm:$0xff]   ;;  %v1821_v20 = vld [vmem:[#allocation9 + $0xf4] ss:$8 sps:$4 sm:$0xff]   ;;  %v1850_v21 = vld [vmem:[#allocation7 + $0x80] ss:$8 sps:$4 sm:$0xff]  }
  0x9d   :  { %665 = vmatprep.subr.bf16.mxu1 %v1791_v10  ;;  %v171_v41 = vmul.f32 %v167_v36, %v155_v24  ;;  %v173_v42 = vmul.f32 %v169_v37, %v157_v25  ;;  %v1818_v16 = vld [vmem:[#allocation9 + $0xe4] ss:$8 sps:$4 sm:$0xff]   ;;  %v166_v22 = vadd.f32 0.7978846, %v162_v14  ;;  %v1851_v23 = vld [vmem:[#allocation7 + $0x94] ss:$8 sps:$4 sm:$0xff]  }
  0x9e   :  { %393 = vmatpush1.bf16.msra.mxu0 %v1835_v44  ;;  %v1853_v25 = vld [vmem:[#allocation7 + $0x90] ss:$8 sps:$4 sm:$0xff]   ;;  %v1856_v30 = vld [vmem:[#allocation7 + $0xa0] ss:$8 sps:$4 sm:$0xff]   ;;  %v174_v32 = vmul.f32 0.5, %v154_v59  ;;  %v176_v33 = vmul.f32 0.5, %v156_v63 }
  0x9f   :  { %1968 = vtanh.f32 %v171_v41  ;;  %394 = vmatprep.subr.bf16.mxu0 %v1836_v45  ;;  %v1823_v26 = vld [vmem:[#allocation9 + $0xf0] ss:$8 sps:$4 sm:$0xff]   ;;  %v170_v28 = vmul.f32 %v166_v22, %v154_v59  ;;  %v1860_v36 = vld [vmem:[#allocation7 + $0xc4] ss:$8 sps:$4 sm:$0xff]   ;;  %v1862_v37 = vld [vmem:[#allocation7 + $0xc0] ss:$8 sps:$4 sm:$0xff]  }
  0xa0   :  { %666 = vmatpush1.bf16.msra.mxu1 %v1793_v11  ;;  %1970 = vtanh.f32 %v173_v42  ;;  %v1817_v11 = vld [vmem:[#allocation9 + $0xd0] ss:$8 sps:$4 sm:$0xff]   ;;  %v1863_v38 = vld [vmem:[#allocation7 + $0xd4] ss:$8 sps:$4 sm:$0xff]   ;;  %v1866_v41 = vld [vmem:[#allocation7 + $0xe4] ss:$8 sps:$4 sm:$0xff]  }
  0xa1   :  { %667 = vmatprep.subr.bf16.mxu1 %v1794_v13  ;;  %1972 = vtanh.f32 %v170_v28  ;;  %v1865_v39 = vld [vmem:[#allocation7 + $0xd0] ss:$8 sps:$4 sm:$0xff]   ;;  %v1869_v44 = vld [vmem:[#allocation7 + $0xf4] ss:$8 sps:$4 sm:$0xff]   ;;  %v1872_v51 = vld [vmem:[#allocation10] ss:$8 sps:$4 sm:$0xff]  }
  0xa2   :  { %395 = vmatpush1.bf16.msra.mxu0 %v1838_v50  ;;  %v1874_v50 = vld [vmem:[#allocation10 + $0x4] ss:$8 sps:$4 sm:$0xff]   ;;  %v1875_v54 = vld [vmem:[#allocation10 + $0x10] ss:$8 sps:$4 sm:$0xff]   ;;  %v1901_v5 = vld [vmem:[#allocation10 + $0x94] ss:$8 sps:$4 sm:$0xff]  }
  0xa3   :  { %396 = vmatprep.subr.bf16.mxu0 %v1839_v52  ;;  %v1886_v59 = vld [vmem:[#allocation10 + $0x44] ss:$8 sps:$4 sm:$0xff]   ;;  %v1911_v14 = vld [vmem:[#allocation10 + $0xd0] ss:$8 sps:$4 sm:$0xff]   ;;  %s2212_s4 = smov [#allocation16]  }
  0xa4   :  { %668 = vmatpush1.bf16.msra.mxu1 %v1796_v17  ;;  %v164_v17 = vmul.f32 0.035677407, %v160_v9  ;;  %v1907_v9 = vld [vmem:[#allocation10 + $0xb4] ss:$8 sps:$4 sm:$0xff]   ;;  %s1530_s28 = sshll.u32 %s2212_s4, 4  ;;  %s1531_s28 = int_to_ptr.vmem [resolvable:$true] %s1530_s28 }
  0xa5   :  { %669 = vmatprep.subr.bf16.mxu1 %v1797_v18  ;;  %v1820_v18 = vld [vmem:[#allocation9 + $0xe0] ss:$8 sps:$4 sm:$0xff]   ;;  %s2164_s0 = scalar_lea.vmem %s1531_s28, 256  ;;  %p2169_p4 = scmp.lt.s32.totalorder %s1531_s28, %s1531_s28 }
  0xa6   :  { %397 = vmatpush1.bf16.msra.mxu0 %v1841_v57  ;;  %v168_v24 = vadd.f32 0.7978846, %v164_v17  ;;  %v1883_v57 = vld [vmem:[#allocation10 + $0x34] ss:$8 sps:$4 sm:$0xff]   ;;  %v1917_v17 = vld [vmem:[#allocation10 + $0xf0] ss:$8 sps:$4 sm:$0xff]   ;;  %p2165_p3 = scmp.ne.s32.totalorder %s1531_s28, %s2164_s0  ;;  %p2170_p5 = scmp.lt.s32.totalorder %s2164_s0, %s2164_s0 }
  0xa7   :  { %398 = vmatprep.subr.bf16.mxu0 %v1842_v60  ;;  %v1884_v60 = vld [vmem:[#allocation10 + $0x40] ss:$8 sps:$4 sm:$0xff]  }
  0xa8   :  { %670 = vmatpush1.bf16.msra.mxu1 %v1799_v27  ;;  %v1854_v27 = vld [vmem:[#allocation7 + $0xa4] ss:$8 sps:$4 sm:$0xff]   ;;  %v172_v29 = vmul.f32 %v168_v24, %v156_v63  ;;  %p2171_p6 = por %p2170_p5, %p2169_p4 }
  0xa9   :  { %671 = vmatprep.subr.bf16.mxu1 %v1800_v31  ;;  %v1969_v61 = vpop.eup %1968  ;;  %v1857_v31 = vld [vmem:[#allocation7 + $0xb4] ss:$8 sps:$4 sm:$0xff]   ;;  %v1892_v63 = vld [vmem:[#allocation10 + $0x64] ss:$8 sps:$4 sm:$0xff]  }
  0xaa   :  { %v1971_v0 = vpop.eup %1970  ;;  %v183_v2 = vmul.f32 %v1969_v61, %v175_v56  ;;  %399 = vmatpush1.bf16.msra.mxu0 %v1844_v3  ;;  %1974 = vtanh.f32 %v172_v29  ;;  %v1889_v61 = vld [vmem:[#allocation10 + $0x54] ss:$8 sps:$4 sm:$0xff]   ;;  %v1898_v3 = vld [vmem:[#allocation10 + $0x84] ss:$8 sps:$4 sm:$0xff]   ;;  %p2172_p7 = pnand %p2171_p6, %p2165_p3 }
  0xab   :  { %v185_v4 = vmul.f32 %v1971_v0, %v177_v58  ;;  %400 = vmatprep.subr.bf16.mxu0 %v1845_v6  ;;  %v1890_v0 = vld [vmem:[#allocation10 + $0x60] ss:$8 sps:$4 sm:$0xff]   ;;  %v1899_v6 = vld [vmem:[#allocation10 + $0x90] ss:$8 sps:$4 sm:$0xff]  }
  0xac   :  { %672 = vmatpush1.bf16.msra.mxu1 %v1802_v35  ;;  %v187_v7 = vadd.f32 %v183_v2, %v175_v56  ;;  %v1859_v35 = vld [vmem:[#allocation7 + $0xb0] ss:$8 sps:$4 sm:$0xff]   ;;  %v1878_v56 = vld [vmem:[#allocation10 + $0x20] ss:$8 sps:$4 sm:$0xff]  }
  0xad   :  { %673 = vmatprep.subr.bf16.mxu1 %v1803_v40  ;;  %v189_v10 = vadd.f32 %v185_v4, %v177_v58  ;;  %v1973_v40 = vpop.eup %1972  ;;  %v1881_v58 = vld [vmem:[#allocation10 + $0x30] ss:$8 sps:$4 sm:$0xff]   ;;  %v1896_v4 = vld [vmem:[#allocation10 + $0x80] ss:$8 sps:$4 sm:$0xff]  }
  0xae   :  { %401 = vmatpush1.bf16.msra.mxu0 %v1847_v12  ;;  %v182_v45 = vmul.f32 %v1973_v40, %v174_v32  ;;  %v1893_v2 = vld [vmem:[#allocation10 + $0x70] ss:$8 sps:$4 sm:$0xff]   ;;  %v1908_v12 = vld [vmem:[#allocation10 + $0xc0] ss:$8 sps:$4 sm:$0xff]  }
  0xaf   :  { %v191_v13 = vpack.c.bf16 %v189_v10, %v187_v7  ;;  %402 = vmatprep.subr.bf16.mxu0 %v1848_v15  ;;  %v1904_v7 = vld [vmem:[#allocation10 + $0xa4] ss:$8 sps:$4 sm:$0xff]   ;;  %v1905_v10 = vld [vmem:[#allocation10 + $0xb0] ss:$8 sps:$4 sm:$0xff]  }
  0xb0   :  { %674 = vmatpush1.bf16.msra.mxu1 %v1805_v43  ;;  %v1868_v43 = vld [vmem:[#allocation7 + $0xe0] ss:$8 sps:$4 sm:$0xff]   ;;  %v186_v48 = vadd.f32 %v182_v45, %v174_v32  ;;  %v1916_v15 = vld [vmem:[#allocation10 + $0xe4] ss:$8 sps:$4 sm:$0xff]  }
  0xb1   :  { %675 = vmatprep.subr.bf16.mxu1 %v1806_v46  ;;  %418 = vmatprep.mubr.bf16.mxu0 %v191_v13  ;;  %v1913_v13 = vld [vmem:[#allocation10 + $0xd4] ss:$8 sps:$4 sm:$0xff]  }
  0xb2   :  { %403 = vmatpush1.bf16.msra.mxu0 %v1850_v21  ;;  %v494_v21 = vstv %s1580_s27 }
  0xb3   :  { %404 = vmatprep.subr.bf16.mxu0 %v1851_v23 }
  0xb4   :  { %676 = vmatpush1.bf16.msra.mxu1 %v1808_v47  ;;  %v1975_v42 = vpop.eup %1974  ;;  %v1871_v47 = vld [vmem:[#allocation7 + $0xf0] ss:$8 sps:$4 sm:$0xff]  }
  0xb5   :  { %677 = vmatprep.subr.bf16.mxu1 %v1809_v53  ;;  %v184_v46 = vmul.f32 %v1975_v42, %v176_v33  ;;  %v1877_v53 = vld [vmem:[#allocation10 + $0x14] ss:$8 sps:$4 sm:$0xff]  }
  0xb6   :  { %405 = vmatpush1.bf16.msra.mxu0 %v1853_v25 }
  0xb7   :  { %406 = vmatprep.subr.bf16.mxu0 %v1854_v27  ;;  %v188_v49 = vadd.f32 %v184_v46, %v176_v33 }
  0xb8   :  { %678 = vmatpush1.bf16.msra.mxu1 %v1811_v55  ;;  %v1880_v55 = vld [vmem:[#allocation10 + $0x24] ss:$8 sps:$4 sm:$0xff]  }
  0xb9   :  { %679 = vmatprep.subr.bf16.mxu1 %v1812_v62  ;;  %v190_v52 = vpack.c.bf16 %v188_v49, %v186_v48  ;;  %v1887_v62 = vld [vmem:[#allocation10 + $0x50] ss:$8 sps:$4 sm:$0xff]  }
  0xba   :  { %407 = vmatpush1.bf16.msra.mxu0 %v1856_v30 }
  0xbb   :  { %408 = vmatprep.subr.bf16.mxu0 %v1857_v31 }
  0xbc   :  { %680 = vmatpush1.bf16.msra.mxu1 %v1814_v1  ;;  %v1895_v1 = vld [vmem:[#allocation10 + $0x74] ss:$8 sps:$4 sm:$0xff]  }
  0xbd   :  { %681 = vmatprep.subr.bf16.mxu1 %v1815_v8  ;;  %v1902_v8 = vld [vmem:[#allocation10 + $0xa0] ss:$8 sps:$4 sm:$0xff]  }
  0xbe   :  { %409 = vmatpush1.bf16.msra.mxu0 %v1859_v35 }
  0xbf   :  { %410 = vmatprep.subr.bf16.mxu0 %v1860_v36 }
  0xc0   :  { %682 = vmatpush1.bf16.msra.mxu1 %v1817_v11  ;;  %v1910_v11 = vld [vmem:[#allocation10 + $0xc4] ss:$8 sps:$4 sm:$0xff]  }
  0xc1   :  { %683 = vmatprep.subr.bf16.mxu1 %v1818_v16  ;;  %v1914_v16 = vld [vmem:[#allocation10 + $0xe0] ss:$8 sps:$4 sm:$0xff]  }
  0xc2   :  { %411 = vmatpush1.bf16.msra.mxu0 %v1862_v37 }
  0xc3   :  { %412 = vmatprep.subr.bf16.mxu0 %v1863_v38 }
  0xc4   :  { %684 = vmatpush1.bf16.msra.mxu1 %v1820_v18  ;;  %v1919_v18 = vld [vmem:[#allocation10 + $0xf4] ss:$8 sps:$4 sm:$0xff]  }
  0xc5   :  { %685 = vmatprep.subr.bf16.mxu1 %v1821_v20  ;;  %v1920_v20 = vld [vmem:[#allocation13 + $0x40] sm:$0xff]  }
  0xc6   :  { %413 = vmatpush1.bf16.msra.mxu0 %v1865_v39 }
  0xc7   :  { %414 = vmatprep.subr.bf16.mxu0 %v1866_v41 }
  0xc8   :  { %686 = vmatpush1.bf16.msra.mxu1 %v1823_v26 }
  0xc9   :  { %1695 = vmatprep.subr.bf16.mxu1 %v1920_v20 }
  0xca   :  { %415 = vmatpush1.bf16.msra.mxu0 %v1868_v43 }
  0xcb   :  { %688 = vmatmul.mubr.bf16.vlgmr.msra.gmra.mrb[0].mxu1 %v2400_v34  ;;  %416 = vmatprep.subr.bf16.mxu0 %v1869_v44 }
  0xce   :  { %417 = vmatpush1.bf16.msra.mxu0 %v1871_v47 }
  0xcf   :  { %926 = vmatprep.subr.bf16.mxu0 %v1874_v50  ;;  %v225_v50 = vstv %s1547_s16 }
  0xd1   :  { %419 = vmatmul.mubr.bf16.vlgmr.msra.gmra.mrb[0].mxu0 %v190_v52 }
  0xd2   :  { %927 = vmatpush1.bf16.msra.mxu0 %v1872_v51 }
  0xd3   :  { %928 = vmatprep.subr.bf16.mxu0 %v1877_v53 }
  0xd6   :  { %929 = vmatpush1.bf16.msra.mxu0 %v1875_v54 }
  0xd7   :  { %930 = vmatprep.subr.bf16.mxu0 %v1880_v55 }
  0xda   :  { %931 = vmatpush1.bf16.msra.mxu0 %v1878_v56 }
  0xdb   :  { %932 = vmatprep.subr.bf16.mxu0 %v1883_v57 }
  0xde   :  { %933 = vmatpush1.bf16.msra.mxu0 %v1881_v58 }
  0xdf   :  { %934 = vmatprep.subr.bf16.mxu0 %v1886_v59 }
  0xe2   :  { %935 = vmatpush1.bf16.msra.mxu0 %v1884_v60 }
  0xe3   :  { %936 = vmatprep.subr.bf16.mxu0 %v1889_v61 }
  0xe6   :  { %937 = vmatpush1.bf16.msra.mxu0 %v1887_v62 }
  0xe7   :  { %938 = vmatprep.subr.bf16.mxu0 %v1892_v63 }
  0xea   :  { %939 = vmatpush1.bf16.msra.mxu0 %v1890_v0 }
  0xeb   :  { %940 = vmatprep.subr.bf16.mxu0 %v1895_v1 }
  0xee   :  { %941 = vmatpush1.bf16.msra.mxu0 %v1893_v2 }
  0xef   :  { %942 = vmatprep.subr.bf16.mxu0 %v1898_v3 }
  0xf2   :  { %943 = vmatpush1.bf16.msra.mxu0 %v1896_v4 }
  0xf3   :  { %944 = vmatprep.subr.bf16.mxu0 %v1901_v5 }
  0xf6   :  { %945 = vmatpush1.bf16.msra.mxu0 %v1899_v6 }
  0xf7   :  { %946 = vmatprep.subr.bf16.mxu0 %v1904_v7 }
  0xfa   :  { %947 = vmatpush1.bf16.msra.mxu0 %v1902_v8 }
  0xfb   :  { %948 = vmatprep.subr.bf16.mxu0 %v1907_v9 }
  0xfe   :  { %949 = vmatpush1.bf16.msra.mxu0 %v1905_v10 }
  0xff   :  { %950 = vmatprep.subr.bf16.mxu0 %v1910_v11 }
 0x102   :  { %951 = vmatpush1.bf16.msra.mxu0 %v1908_v12 }
 0x103   :  { %952 = vmatprep.subr.bf16.mxu0 %v1913_v13 }
 0x106   :  { %953 = vmatpush1.bf16.msra.mxu0 %v1911_v14 }
 0x107   :  { %954 = vmatprep.subr.bf16.mxu0 %v1916_v15 }
 0x10a   :  { %955 = vmatpush1.bf16.msra.mxu0 %v1914_v16 }
 0x10b   :  { %956 = vmatprep.subr.bf16.mxu0 %v1919_v18 }
 0x10e   :  { %957 = vmatpush1.bf16.msra.mxu0 %v1917_v17 }
 0x19e   :  { %v689_v22 = vpop.f32.mrb[0].mxu1 }
 0x19f   :  { %v690_v23 = vadd.f32 %v689_v22, %v494_v21  ;;  %v691_v24 = vpop.f32.mrb[1].mxu1 }
 0x1a0   :  { %v692_v25 = vadd.f32 %v691_v24, %v494_v21  ;;  %v693_v26 = vpop.f32.mrb[2].mxu1 }
 0x1a1   :  { %v698_v27 = vmul.f32 %v690_v23, %v690_v23  ;;  %v694_v28 = vadd.f32 %v693_v26, %v494_v21  ;;  %v695_v29 = vpop.f32.mrb[3].mxu1  ;;  %v714_v47 = vmul.f32 0.5, %v690_v23 }
 0x1a2   :  { %v699_v30 = vmul.f32 %v692_v25, %v692_v25  ;;  %v696_v31 = vadd.f32 %v695_v29, %v494_v21  ;;  %v715_v49 = vmul.f32 0.5, %v692_v25 }
 0x1a3   :  { %v702_v32 = vmul.f32 0.035677407, %v698_v27  ;;  %v700_v33 = vmul.f32 %v694_v28, %v694_v28  ;;  %v716_v53 = vmul.f32 0.5, %v694_v28 }
 0x1a4   :  { %v703_v35 = vmul.f32 0.035677407, %v699_v30  ;;  %v701_v36 = vmul.f32 %v696_v31, %v696_v31  ;;  %v717_v56 = vmul.f32 0.5, %v696_v31  ;;  %v420_v57 = vpop.f32.mrb[0].mxu0 }
 0x1a5   :  { %v706_v37 = vadd.f32 0.7978846, %v702_v32  ;;  %v704_v38 = vmul.f32 0.035677407, %v700_v33  ;;  %v421_v60 = vadd.f32 %v420_v57, %v225_v50  ;;  %v422_v61 = vpop.f32.mrb[1].mxu0  ;;  %v1933_v57 = vld [vmem:[#allocation13 + $0x30] sm:$0xff]  }
 0x1a6   :  { %v707_v39 = vadd.f32 0.7978846, %v703_v35  ;;  %v705_v40 = vmul.f32 0.035677407, %v701_v36  ;;  %v423_v63 = vadd.f32 %v422_v61, %v225_v50  ;;  %v424_v0 = vpop.f32.mrb[2].mxu0  ;;  %v1937_v61 = vld [vmem:[#allocation12 + $0x40] sm:$0xff]  }
 0x1a7   :  { %v710_v41 = vmul.f32 %v706_v37, %v690_v23  ;;  %v708_v42 = vadd.f32 0.7978846, %v704_v38  ;;  %v429_v3 = vmul.f32 %v421_v60, %v421_v60  ;;  %v425_v4 = vadd.f32 %v424_v0, %v225_v50  ;;  %v426_v5 = vpop.f32.mrb[3].mxu0  ;;  %v1942_v0 = vld [vmem:[#allocation15 + $0x8] sm:$0xff]  }
 0x1a8   :  { %v711_v43 = vmul.f32 %v707_v39, %v692_v25  ;;  %v709_v44 = vadd.f32 0.7978846, %v705_v40  ;;  %v430_v8 = vmul.f32 %v423_v63, %v423_v63  ;;  %v427_v9 = vadd.f32 %v426_v5, %v225_v50  ;;  %v1926_v50 = vld [vmem:[#allocation13 + $0x58] sm:$0xff]   ;;  %v1952_v5 = vld [vmem:[#allocation15 + $0x60] sm:$0xff]  }
 0x1a9   :  { %1976 = vtanh.f32 %v710_v41  ;;  %v712_v45 = vmul.f32 %v708_v42, %v694_v28  ;;  %v433_v11 = vmul.f32 0.035677407, %v429_v3  ;;  %v431_v12 = vmul.f32 %v425_v4, %v425_v4  ;;  %v1948_v3 = vld [vmem:[#allocation15 + $0x58] sm:$0xff]  }
 0x1aa   :  { %1978 = vtanh.f32 %v711_v43  ;;  %v713_v46 = vmul.f32 %v709_v44, %v696_v31  ;;  %v434_v14 = vmul.f32 0.035677407, %v430_v8  ;;  %v432_v15 = vmul.f32 %v427_v9, %v427_v9  ;;  %v1958_v8 = vld [vmem:[#allocation15 + $0x28] sm:$0xff]  }
 0x1ab   :  { %1980 = vtanh.f32 %v712_v45  ;;  %v437_v16 = vadd.f32 0.7978846, %v433_v11  ;;  %v435_v17 = vmul.f32 0.035677407, %v431_v12  ;;  %v445_v28 = vmul.f32 0.5, %v421_v60  ;;  %v1921_v45 = vld [vmem:[#allocation13] sm:$0xff]  }
 0x1ac   :  { %1982 = vtanh.f32 %v713_v46  ;;  %v436_v18 = vmul.f32 0.035677407, %v432_v15  ;;  %v438_v20 = vadd.f32 0.7978846, %v434_v14  ;;  %v447_v29 = vmul.f32 0.5, %v425_v4  ;;  %1696 = vmatpush3.bf16.msra.mxu1 %v1921_v45  ;;  %v1922_v46 = vld [vmem:[#allocation13 + $0x48] sm:$0xff]  }
 0x1ad   :  { %v439_v21 = vadd.f32 0.7978846, %v435_v17  ;;  %v441_v23 = vmul.f32 %v437_v16, %v421_v60  ;;  %v446_v32 = vmul.f32 0.5, %v423_v63  ;;  %v448_v33 = vmul.f32 0.5, %v427_v9  ;;  %1697 = vmatprep.subr.bf16.mxu1 %v1922_v46  ;;  %v1936_v60 = vld [vmem:[#allocation15 + $0x40] sm:$0xff]   ;;  %v1964_v11 = vld [vmem:[#allocation15 + $0x78] sm:$0xff]  }
 0x1ae   :  { %v440_v22 = vadd.f32 0.7978846, %v436_v18  ;;  %v442_v25 = vmul.f32 %v438_v20, %v423_v63  ;;  %1739 = vmatprep.subr.bf16.mxu0 %v1936_v60  ;;  %v1940_v63 = vld [vmem:[#allocation15 + $0x48] sm:$0xff]   ;;  %v1966_v12 = vld [vmem:[#allocation15 + $0x38] sm:$0xff]  }
 0x1af   :  { %v443_v24 = vmul.f32 %v439_v21, %v425_v4  ;;  %1984 = vtanh.f32 %v441_v23  ;;  %v1950_v4 = vld [vmem:[#allocation15 + $0x18] sm:$0xff]  }
 0x1b0   :  { %v444_v26 = vmul.f32 %v440_v22, %v427_v9  ;;  %v1960_v9 = vld [vmem:[#allocation15 + $0x70] sm:$0xff]  }
 0x1b1   :  { %1986 = vtanh.f32 %v443_v24 }
 0x1b2   :  { %1988 = vtanh.f32 %v442_v25 }
 0x1b3   :  { %v1977_v48 = vpop.eup %1976  ;;  %1990 = vtanh.f32 %v444_v26 }
 0x1b4   :  { %v1979_v51 = vpop.eup %1978  ;;  %v722_v52 = vmul.f32 %v1977_v48, %v714_v47  ;;  %v1924_v48 = vld [vmem:[#allocation13 + $0x50] sm:$0xff]  }
 0x1b5   :  { %v1981_v54 = vpop.eup %1980  ;;  %v723_v55 = vmul.f32 %v1979_v51, %v715_v49  ;;  %v1927_v51 = vld [vmem:[#allocation13 + $0x18] sm:$0xff]  }
 0x1b6   :  { %v1983_v58 = vpop.eup %1982  ;;  %v724_v59 = vmul.f32 %v1981_v54, %v716_v53  ;;  %v726_v1 = vadd.f32 %v722_v52, %v714_v47  ;;  %v1923_v47 = vld [vmem:[#allocation13 + $0x8] sm:$0xff]   ;;  %v1928_v52 = vld [vmem:[#allocation13 + $0x60] sm:$0xff]  }
 0x1b7   :  { %v725_v62 = vmul.f32 %v1983_v58, %v717_v56  ;;  %v727_v6 = vadd.f32 %v723_v55, %v715_v49  ;;  %1698 = vmatpush3.bf16.msra.mxu1 %v1923_v47  ;;  %v1925_v49 = vld [vmem:[#allocation13 + $0x10] sm:$0xff]   ;;  %v1930_v54 = vld [vmem:[#allocation13 + $0x68] sm:$0xff]   ;;  %v1934_v58 = vld [vmem:[#allocation13 + $0x78] sm:$0xff]  }
 0x1b8   :  { %v728_v2 = vadd.f32 %v724_v59, %v716_v53  ;;  %1699 = vmatprep.subr.bf16.mxu1 %v1924_v48  ;;  %v1929_v53 = vld [vmem:[#allocation13 + $0x20] sm:$0xff]   ;;  %v1931_v55 = vld [vmem:[#allocation13 + $0x28] sm:$0xff]   ;;  %v1935_v59 = vld [vmem:[#allocation13 + $0x38] sm:$0xff]  }
 0x1b9   :  { %v729_v7 = vadd.f32 %v725_v62, %v717_v56  ;;  %v1985_v27 = vpop.eup %1984  ;;  %v1932_v56 = vld [vmem:[#allocation13 + $0x70] sm:$0xff]   ;;  %v1938_v62 = vld [vmem:[#allocation15] sm:$0xff]  }
 0x1ba   :  { %v730_v10 = vpack.c.bf16 %v728_v2, %v726_v1  ;;  %v453_v36 = vmul.f32 %v1985_v27, %v445_v28  ;;  %v1944_v1 = vld [vmem:[#allocation15 + $0x50] sm:$0xff]  }
 0x1bb   :  { %v731_v13 = vpack.c.bf16 %v729_v7, %v727_v6  ;;  %v1987_v30 = vpop.eup %1986  ;;  %1700 = vmatpush3.bf16.msra.mxu1 %v1925_v49  ;;  %v1946_v2 = vld [vmem:[#allocation15 + $0x10] sm:$0xff]   ;;  %v1954_v6 = vld [vmem:[#allocation15 + $0x20] sm:$0xff]   ;;  %v1956_v7 = vld [vmem:[#allocation15 + $0x68] sm:$0xff]  }
 0x1bc   :  { %v1989_v31 = vpop.eup %1988  ;;  %v455_v37 = vmul.f32 %v1987_v30, %v447_v29  ;;  %v2404_v39 = vadd.f32 %v453_v36, %v445_v28  ;;  %1701 = vmatprep.subr.bf16.mxu1 %v1926_v50 }
 0x1bd   :  { %958 = vmatprep.mubr.bf16.mxu0 %v731_v13  ;;  %v1991_v35 = vpop.eup %1990  ;;  %v454_v38 = vmul.f32 %v1989_v31, %v446_v32  ;;  %v765_v13 = vstv %s1613_s23 }
 0x1be   :  { %959 = vmatmul.mubr.bf16.vlgmr.msra.gmra.mrb[4].mxu0 %v730_v10  ;;  %v2406_v40 = vadd.f32 %v455_v37, %v447_v29  ;;  %v1962_v10 = vld [vmem:[#allocation15 + $0x30] sm:$0xff]  }
 0x1bf   :  { %1503 = vmatprep.mubr.bf16.mxu0 %v2381_v19  ;;  %v456_v19 = vmul.f32 %v1991_v35, %v448_v33  ;;  %v2408_v41 = vadd.f32 %v454_v38, %v446_v32  ;;  %1702 = vmatpush3.bf16.msra.mxu1 %v1927_v51 }
 0x1c0   :  { %v1001_v44 = vpack.c.bf16 %v2406_v40, %v2404_v39  ;;  %1703 = vmatprep.subr.bf16.mxu1 %v1928_v52  ;;  %1740 = vmatpush3.bf16.msra.mxu0 %v1938_v62  ;;  %v1939_v62 = vld [vmem:[#allocation12] sm:$0xff]  }
 0x1c1   :  { %v2410_v42 = vadd.f32 %v456_v19, %v448_v33  ;;  %1741 = vmatprep.subr.bf16.mxu0 %v1940_v63  ;;  %v1941_v63 = vld [vmem:[#allocation12 + $0x48] sm:$0xff]   ;;  %v1694_v40 = vld [vmem:[%s2449_s8] ss:$0 sm:$0xff] }
 0x1c3   :  { %v1002_v43 = vpack.c.bf16 %v2410_v42, %v2408_v41  ;;  %1704 = vmatpush3.bf16.msra.mxu1 %v1929_v53  ;;  %v1961_v41 = vld [vmem:[#allocation12 + $0x70] sm:$0xff]  }
 0x1c4   :  { %1705 = vmatprep.subr.bf16.mxu1 %v1930_v54  ;;  %1742 = vmatpush3.bf16.msra.mxu0 %v1942_v0  ;;  %v1943_v0 = vld [vmem:[#allocation12 + $0x8] sm:$0xff]   ;;  %v1963_v42 = vld [vmem:[#allocation12 + $0x30] sm:$0xff]  }
 0x1c5   :  { %1743 = vmatprep.subr.bf16.mxu0 %v1944_v1  ;;  %v1945_v1 = vld [vmem:[#allocation12 + $0x50] sm:$0xff]  }
 0x1c7   :  { %1706 = vmatpush3.bf16.msra.mxu1 %v1931_v55 }
 0x1c8   :  { %1707 = vmatprep.subr.bf16.mxu1 %v1932_v56  ;;  %1744 = vmatpush3.bf16.msra.mxu0 %v1946_v2  ;;  %v1947_v2 = vld [vmem:[#allocation12 + $0x10] sm:$0xff]  }
 0x1c9   :  { %1745 = vmatprep.subr.bf16.mxu0 %v1948_v3  ;;  %v1949_v3 = vld [vmem:[#allocation12 + $0x58] sm:$0xff]  }
 0x1cb   :  { %1708 = vmatpush3.bf16.msra.mxu1 %v1933_v57 }
 0x1cc   :  { %1709 = vmatprep.subr.bf16.mxu1 %v1934_v58  ;;  %1746 = vmatpush3.bf16.msra.mxu0 %v1950_v4  ;;  %v1951_v4 = vld [vmem:[#allocation12 + $0x18] sm:$0xff]  }
 0x1cd   :  { %1747 = vmatprep.subr.bf16.mxu0 %v1952_v5  ;;  %v1953_v5 = vld [vmem:[#allocation12 + $0x60] sm:$0xff]  }
 0x1cf   :  { %1710 = vmatpush3.bf16.msra.mxu1 %v1935_v59 }
 0x1d0   :  { %1717 = vmatprep.subr.bf16.mxu1 %v1937_v61  ;;  %1748 = vmatpush3.bf16.msra.mxu0 %v1954_v6  ;;  %v1955_v6 = vld [vmem:[#allocation12 + $0x20] sm:$0xff]  }
 0x1d1   :  { %1749 = vmatprep.subr.bf16.mxu0 %v1956_v7  ;;  %v1957_v7 = vld [vmem:[#allocation12 + $0x68] sm:$0xff]  }
 0x1d4   :  { %1750 = vmatpush3.bf16.msra.mxu0 %v1958_v8  ;;  %v1959_v8 = vld [vmem:[#allocation12 + $0x28] sm:$0xff]  }
 0x1d5   :  { %1751 = vmatprep.subr.bf16.mxu0 %v1960_v9  ;;  %v1967_v9 = vld [vmem:[#allocation12 + $0x38] sm:$0xff]  }
 0x1d8   :  { %1752 = vmatpush3.bf16.msra.mxu0 %v1962_v10 }
 0x1d9   :  { %1753 = vmatprep.subr.bf16.mxu0 %v1964_v11 }
 0x1dc   :  { %1754 = vmatpush3.bf16.msra.mxu0 %v1966_v12 }
 0x1df   :  { %1504 = vmatmul.mubr.bf16.vlgmr.msra.gmra.mrb[8].mxu0 %v2400_v34 }
 0x291   :  { %v960_v14 = vpop.f32.mrb[4].mxu0 }
 0x292   :  { %v961_v15 = vadd.f32 %v960_v14, %v765_v13  ;;  %v962_v16 = vpop.f32.mrb[5].mxu0 }
 0x293   :  { %v963_v17 = vadd.f32 %v962_v16, %v765_v13  ;;  %v964_v18 = vpop.f32.mrb[6].mxu0 }
 0x294   :  { %v969_v20 = vmul.f32 %v961_v15, %v961_v15  ;;  %v965_v21 = vadd.f32 %v964_v18, %v765_v13  ;;  %v966_v22 = vpop.f32.mrb[7].mxu0  ;;  %v985_v19 = vmul.f32 0.5, %v961_v15 }
 0x295   :  { %v970_v23 = vmul.f32 %v963_v17, %v963_v17  ;;  %v967_v24 = vadd.f32 %v966_v22, %v765_v13  ;;  %v986_v46 = vmul.f32 0.5, %v963_v17 }
 0x296   :  { %v973_v25 = vmul.f32 0.035677407, %v969_v20  ;;  %v971_v26 = vmul.f32 %v965_v21, %v965_v21  ;;  %v987_v49 = vmul.f32 0.5, %v965_v21 }
 0x297   :  { %v974_v27 = vmul.f32 0.035677407, %v970_v23  ;;  %v972_v28 = vmul.f32 %v967_v24, %v967_v24  ;;  %v988_v52 = vmul.f32 0.5, %v967_v24 }
 0x298   :  { %v977_v29 = vadd.f32 0.7978846, %v973_v25  ;;  %v975_v30 = vmul.f32 0.035677407, %v971_v26 }
 0x299   :  { %v978_v31 = vadd.f32 0.7978846, %v974_v27  ;;  %v976_v34 = vmul.f32 0.035677407, %v972_v28 }
 0x29a   :  { %v981_v32 = vmul.f32 %v977_v29, %v961_v15  ;;  %v979_v33 = vadd.f32 0.7978846, %v975_v30 }
 0x29b   :  { %v982_v35 = vmul.f32 %v978_v31, %v963_v17  ;;  %v980_v36 = vadd.f32 0.7978846, %v976_v34 }
 0x29c   :  { %1992 = vtanh.f32 %v981_v32  ;;  %v983_v37 = vmul.f32 %v979_v33, %v965_v21 }
 0x29d   :  { %1994 = vtanh.f32 %v982_v35  ;;  %v984_v38 = vmul.f32 %v980_v36, %v967_v24 }
 0x29e   :  { %1996 = vtanh.f32 %v983_v37 }
 0x29f   :  { %1998 = vtanh.f32 %v984_v38 }
 0x2a6   :  { %v1993_v45 = vpop.eup %1992 }
 0x2a7   :  { %v1995_v47 = vpop.eup %1994  ;;  %v993_v48 = vmul.f32 %v1993_v45, %v985_v19 }
 0x2a8   :  { %v1997_v50 = vpop.eup %1996  ;;  %v994_v51 = vmul.f32 %v1995_v47, %v986_v46 }
 0x2a9   :  { %v1999_v53 = vpop.eup %1998  ;;  %v995_v54 = vmul.f32 %v1997_v50, %v987_v49  ;;  %v997_v56 = vadd.f32 %v993_v48, %v985_v19 }
 0x2aa   :  { %v996_v55 = vmul.f32 %v1999_v53, %v988_v52  ;;  %v998_v58 = vadd.f32 %v994_v51, %v986_v46 }
 0x2ab   :  { %v999_v57 = vadd.f32 %v995_v54, %v987_v49 }
 0x2ac   :  { %v1000_v59 = vadd.f32 %v996_v55, %v988_v52 }
 0x2ad   :  { %v1035_v60 = vpack.c.bf16 %v999_v57, %v997_v56 }
 0x2ae   :  { %v1036_v61 = vpack.c.bf16 %v1000_v59, %v998_v58 }
 0x2b0   :  { %1197 = vmatprep.mubr.bf16.mxu1 %v1036_v61 }
 0x2b1   :  { %1198 = vmatmul.mubr.bf16.vlgmr.msra.gmra.mrb[4].mxu1 %v1035_v60 }
 0x2b2   :  { %1718 = vmatpush3.bf16.msra.mxu1 %v1939_v62  ;;  %1334 = vmatprep.mubr.bf16.mxu1 %v1002_v43  ;;  %v1965_v43 = vld [vmem:[#allocation12 + $0x78] sm:$0xff]   ;;  %v1755_v10 = vpop.f32.mrb[8].mxu0 }
 0x2b3   :  { %1719 = vmatprep.subr.bf16.mxu1 %v1941_v63  ;;  %v1756_v11 = vpop.f32.mrb[9].mxu0 }
 0x2b4   :  { %v1757_v12 = vadd.f32 %v1756_v11, %v1755_v10  ;;  %v1758_v13 = vpop.f32.mrb[10].mxu0 }
 0x2b5   :  { %v1759_v14 = vpop.f32.mrb[11].mxu0 }
 0x2b6   :  { %1720 = vmatpush3.bf16.msra.mxu1 %v1943_v0  ;;  %v1760_v15 = vadd.f32 %v1759_v14, %v1758_v13 }
 0x2b7   :  { %1721 = vmatprep.subr.bf16.mxu1 %v1945_v1 }
 0x2ba   :  { %1722 = vmatpush3.bf16.msra.mxu1 %v1947_v2 }
 0x2bb   :  { %1723 = vmatprep.subr.bf16.mxu1 %v1949_v3 }
 0x2be   :  { %1724 = vmatpush3.bf16.msra.mxu1 %v1951_v4 }
 0x2bf   :  { %1725 = vmatprep.subr.bf16.mxu1 %v1953_v5 }
 0x2c2   :  { %1726 = vmatpush3.bf16.msra.mxu1 %v1955_v6 }
 0x2c3   :  { %1727 = vmatprep.subr.bf16.mxu1 %v1957_v7 }
 0x2c6   :  { %1728 = vmatpush3.bf16.msra.mxu1 %v1959_v8 }
 0x2c7   :  { %1729 = vmatprep.subr.bf16.mxu1 %v1961_v41 }
 0x2ca   :  { %1730 = vmatpush3.bf16.msra.mxu1 %v1963_v42 }
 0x2cb   :  { %1731 = vmatprep.subr.bf16.mxu1 %v1965_v43 }
 0x2ce   :  { %1732 = vmatpush3.bf16.msra.mxu1 %v1967_v9 }
 0x2d1   :  { %1335 = vmatmul.mubr.bf16.vlgmr.msra.gmra.mrb[8].mxu1 %v1001_v44 }
 0x384   :  { %v1711_v16 = vpop.f32.mrb[4].mxu1 }
 0x385   :  { %v1712_v17 = vpop.f32.mrb[5].mxu1 }
 0x386   :  { %v1713_v18 = vadd.f32 %v1712_v17, %v1711_v16  ;;  %v1714_v20 = vpop.f32.mrb[6].mxu1 }
 0x387   :  { %v1715_v21 = vpop.f32.mrb[7].mxu1 }
 0x388   :  { %v1716_v22 = vadd.f32 %v1715_v21, %v1714_v20 }
 0x3a4   :  { %v1733_v23 = vpop.f32.mrb[8].mxu1 }
 0x3a5   :  { %v1734_v24 = vpop.f32.mrb[9].mxu1 }
 0x3a6   :  { %v1735_v25 = vadd.f32 %v1734_v24, %v1733_v23  ;;  %v1736_v26 = vpop.f32.mrb[10].mxu1 }
 0x3a7   :  { %v1737_v27 = vpop.f32.mrb[11].mxu1 }
 0x3a8   :  { %v1337_v28 = vadd.f32 %v1735_v25, %v1713_v18  ;;  %v1738_v39 = vadd.f32 %v1737_v27, %v1736_v26 }
 0x3aa   :  { %v1340_v44 = vadd.f32 %v1738_v39, %v1716_v22  ;;  %v1512_v29 = vadd.f32 %v1757_v12, %v1337_v28 }
 0x3ac   :  { %v1513_v30 = vadd.f32 %v1760_v15, %v1340_v44  ;;  %v1521_v31 = vadd.f32 %v1694_v40, %v1512_v29 }
 0x3ae   :  { %v1522_v34 = vadd.f32 %v1694_v40, %v1513_v30  ;;  %1523 = vst [vmem:[#allocation16] sm:$0xff] %v1521_v31 }
 0x3b0   :  { %1524 = vst [vmem:[#allocation16 + $0x8] sm:$0xff] %v1522_v34 }
 0x3b1   :  { %2175 = shalt.err (!%p2172_p7)
}
 0x3b2   :  { %s2176_s8 = scalar_lea.hbm %s2450_s9, 256 }
 0x3b3   :  { %p2177_p8 = scmp.ne.s32.totalorder %s2450_s9, %s2176_s8  ;;  %p2180_p9 = scmp.lt.u32.totalorder %s2176_s8, %s2450_s9 }
 0x3b5   :  { %p2182_p10 = pnand %p2180_p9, %p2177_p8 }
 0x3b7   :  { %2185 = shalt.err (!%p2182_p10)
}
 0x3b8   :  { %1536 = dma.vmem_to_hbm [thread:$0]  %s1531_s28, 256, %s2450_s9, [#allocation4], %s2199_s19, %s2199_s19, %s2200_s20  }
 0x3b9   :  { %2196 = dma.done.wait [#allocation4], 256  }
 0x3ba   :  { %2197 = vsyncadd [#allocation4], 4294967040 }
 0x3bb   :  { %1540 = vsyncpa [#allocation3], 1 }
 0x3bc   :  { %1541 = vsyncpa [#allocation8], 1 }
 0x3bd   :  { %1542 = vsyncpa [#allocation11], 1 }
 0x3be   :  { %1543 = vsyncpa [#allocation14], 1 }
 0x3bf   :  { %1544 = vsyncpa [#allocation4], 1 }
 0x3c0   :  { %1545 = vsyncpa [#allocation5], 1 }

</bundles_post_ra>
